<compile_context>
chip_gen: v7x
topology: tpu7x:2x2x1
jax: 0.10.0
libtpu: 0.0.40
codegen_flags: <defaults>
</compile_context>

<pallas_src>
import jax
import jax.numpy as jnp
from jax.experimental import pallas as pl
from jax.experimental.pallas import tpu as pltpu


def _round_up(x, m):
    return (x + m - 1) // m * m


def prenorm_kernel(x_ref, gamma_ref, beta_ref, w_ref, b_ref, o_ref):
    # x_ref: (TM, D) tile of tokens; LayerNorm reduction over last axis in f32.
    x = x_ref[...].astype(jnp.float32)

    mean = jnp.mean(x, axis=-1, keepdims=True)
    xc = x - mean
    var = jnp.mean(xc * xc, axis=-1, keepdims=True)   # biased, like nn.LayerNorm
    inv = jax.lax.rsqrt(var + 1e-5)
    # gamma/beta arrive pre-cast to f32 from the wrapper (no per-iter casts).
    xn = xc * inv * gamma_ref[...] + beta_ref[...]

    # fn(x): Linear(D, D_out) on the MXU — bf16 operands, f32 accumulate —
    # then GELU fused in-kernel (tanh approximation -> EUP slot, ~free).
    y = jnp.dot(xn.astype(jnp.bfloat16), w_ref[...],
                preferred_element_type=jnp.float32)
    y = y + b_ref[...]                                 # bias pre-cast to f32
    y = jax.nn.gelu(y, approximate=True)

    o_ref[...] = y.astype(o_ref.dtype)


def prenorm(x, gamma, beta, w, b, *, tile_rows=1024, out_dtype=jnp.bfloat16):
    """PreNorm with fn = Linear + GELU: y = gelu(LayerNorm(x) @ w + b).

    x: (B, N, D) f32 or bf16; gamma/beta: (D,) or (1, D) [torch layout];
    w: (D, D_out); b: (D_out,) or (1, D_out).  Returns (B, N, D_out) in
    `out_dtype` (bf16 by default — this kernel is HBM-bandwidth bound and the
    wide output dominates traffic; pass out_dtype=jnp.float32 if required).
    """
    B, N, D = x.shape
    D_out = w.shape[-1]

    M = B * N
    x2 = x.reshape(M, D)          # no dtype cast here (anti-pattern)

    # Parameter residency: cast once here so the kernel avoids per-iteration
    # VPU cast work.  Weight in bf16 (MXU-native), LN affine + bias in f32.
    gamma2 = jnp.asarray(gamma, jnp.float32).reshape(1, D)
    beta2 = jnp.asarray(beta, jnp.float32).reshape(1, D)
    w2 = jnp.asarray(w, jnp.bfloat16)
    b2 = jnp.asarray(b, jnp.float32).reshape(1, D_out)

    # Lane-dense output: zero-pad the weight's output columns to a multiple of
    # 128 so stores are unmasked vst (no-op when D_out is already aligned).
    D_out_p = _round_up(D_out, 128)
    if D_out_p != D_out:
        w2 = jnp.pad(w2, ((0, 0), (0, D_out_p - D_out)))
        b2 = jnp.pad(b2, ((0, 0), (0, D_out_p - D_out)))

    # Row tiling: big tiles (>=85% HBM roofline at 512+, ~86% at 1024+), but
    # capped so there are always >= 2 tiles — on v7x the "parallel" grid axis
    # only shards across both TensorCores if grid >= 2.  No wrapper-side row
    # padding: grid = cdiv(M, tm) and Pallas masks the ragged tail tile
    # (safe: each output row depends only on its own input row).
    tm = max(8, min(int(tile_rows), _round_up(pl.cdiv(M, 2), 8)))
    grid = pl.cdiv(M, tm)

    # VMEM budget (double-buffered x + out tiles, lane-padded, plus weight).
    # Only override the scoped default when we would actually exceed the
    # smallest one (v5e: 16 MiB); cap under the v7x physical 64 MiB.
    x_tile_b = tm * _round_up(D, 128) * x2.dtype.itemsize
    o_tile_b = tm * D_out_p * jnp.dtype(out_dtype).itemsize
    w_b = _round_up(D, 16) * D_out_p * 2
    est = 2 * (x_tile_b + o_tile_b) + w_b + (1 << 20)
    vmem_limit = None if est <= (14 << 20) else min(_round_up(est, 1 << 20), 64 << 20)

    compiler_params = pltpu.CompilerParams(
        dimension_semantics=("parallel",),   # lets v7x shard row tiles on 2 TCs
        vmem_limit_bytes=vmem_limit,
    )

    out = pl.pallas_call(
        prenorm_kernel,
        out_shape=jax.ShapeDtypeStruct((M, D_out_p), out_dtype),
        grid_spec=pltpu.PrefetchScalarGridSpec(
            num_scalar_prefetch=0,
            grid=(grid,),
            in_specs=[
                pl.BlockSpec((tm, D), lambda i: (i, 0)),        # x tile (streamed)
                pl.BlockSpec((1, D), lambda i: (0, 0)),         # gamma (resident)
                pl.BlockSpec((1, D), lambda i: (0, 0)),         # beta  (resident)
                pl.BlockSpec((D, D_out_p), lambda i: (0, 0)),   # fn weight (resident)
                pl.BlockSpec((1, D_out_p), lambda i: (0, 0)),   # fn bias (resident)
            ],
            out_specs=pl.BlockSpec((tm, D_out_p), lambda i: (i, 0)),
        ),
        compiler_params=compiler_params,
    )(x2, gamma2, beta2, w2, b2)

    if D_out_p != D_out:
        out = out[:, :D_out]
    return out.reshape(B, N, D_out)


if __name__ == "__main__":
    key = jax.random.PRNGKey(0)
    B, N, D = 2, 64, 32          # batch=2, 8x8 spatial tokens, dim=32
    D_out = 4 * D                # fn = FeedForward expand Linear(dim, 4*dim)

    k_x, k_g, k_b, k_w, k_bias = jax.random.split(key, 5)
    x = jax.random.normal(k_x, (B, N, D), dtype=jnp.float32)

    # torch-layout parameters: gamma/beta (D,), w (D, D_out), bias (D_out,)
    gamma = jnp.ones((D,), jnp.float32) + 0.01 * jax.random.normal(k_g, (D,), jnp.float32)
    beta = 0.01 * jax.random.normal(k_b, (D,), jnp.float32)
    w = jax.random.normal(k_w, (D, D_out), jnp.float32) / jnp.sqrt(D)
    b = 0.01 * jax.random.normal(k_bias, (D_out,), jnp.float32)

    y = prenorm(x, gamma, beta, w, b)
    y = jax.block_until_ready(y)

    # Pure-JAX f32 reference (LayerNorm -> Linear -> GELU).  Tolerance is
    # loosened because the kernel uses bf16 matmul operands and a bf16 output
    # (f32 accumulation, f32 LN statistics).
    mean = jnp.mean(x, axis=-1, keepdims=True)
    var = jnp.mean((x - mean) ** 2, axis=-1, keepdims=True)
    xn = (x - mean) * jax.lax.rsqrt(var + 1e-5) * gamma + beta
    ref = jax.nn.gelu(xn @ w + b, approximate=True)

    assert y.shape == ref.shape, "shape mismatch vs reference"
    assert jnp.allclose(y.astype(jnp.float32), ref, atol=5e-2, rtol=5e-2), \
        "mismatch vs reference"

    print("KERNEL_OK")
</pallas_src>

<mosaic_0001>
module attributes {stable_mosaic.version = 11 : i64} {
  func.func @prenorm_kernel(%arg0: i32, %arg1: memref<64x32xf32, #tpu.memory_space<vmem>>, %arg2: memref<1x32xf32, #tpu.memory_space<vmem>>, %arg3: memref<1x32xf32, #tpu.memory_space<vmem>>, %arg4: memref<32x128xbf16, #tpu.memory_space<vmem>>, %arg5: memref<1x128xf32, #tpu.memory_space<vmem>>, %arg6: memref<64x128xbf16, #tpu.memory_space<vmem>>) attributes {dimension_semantics = [#tpu.dimension_semantics<parallel>], iteration_bounds = array<i64: 2>, scalar_prefetch = 0 : i64, scratch_operands = 0 : i64, tpu.core_type = #tpu.core_type<tc>, window_params = [{transform_indices = @transform_0, window_bounds = array<i64: 64, 32>}, {pipeline_mode = #tpu.pipeline_mode<synchronous>, transform_indices = @transform_1, window_bounds = array<i64: 1, 32>}, {pipeline_mode = #tpu.pipeline_mode<synchronous>, transform_indices = @transform_2, window_bounds = array<i64: 1, 32>}, {pipeline_mode = #tpu.pipeline_mode<synchronous>, transform_indices = @transform_3, window_bounds = array<i64: 32, 128>}, {pipeline_mode = #tpu.pipeline_mode<synchronous>, transform_indices = @transform_4, window_bounds = array<i64: 1, 128>}, {transform_indices = @transform_5, window_bounds = array<i64: 64, 128>}]} {
    %c0 = arith.constant 0 : index
    %c0_0 = arith.constant 0 : index
    %0 = vector.load %arg1[%c0, %c0_0] : memref<64x32xf32, #tpu.memory_space<vmem>>, vector<64x32xf32>
    %cst = arith.constant dense<0.000000e+00> : vector<64xf32>
    %1 = vector.multi_reduction <add>, %0, %cst [1] : vector<64x32xf32> to vector<64xf32>
    %2 = vector.shape_cast %1 : vector<64xf32> to vector<64x1xf32>
    %cst_1 = arith.constant 3.200000e+01 : f32
    %3 = vector.broadcast %cst_1 : f32 to vector<64x1xf32>
    %4 = arith.divf %2, %3 : vector<64x1xf32>
    %5 = vector.broadcast %4 : vector<64x1xf32> to vector<64x32xf32>
    %6 = arith.subf %0, %5 : vector<64x32xf32>
    %7 = arith.mulf %6, %6 : vector<64x32xf32>
    %cst_2 = arith.constant dense<0.000000e+00> : vector<64xf32>
    %8 = vector.multi_reduction <add>, %7, %cst_2 [1] : vector<64x32xf32> to vector<64xf32>
    %9 = vector.shape_cast %8 : vector<64xf32> to vector<64x1xf32>
    %cst_3 = arith.constant 3.200000e+01 : f32
    %10 = vector.broadcast %cst_3 : f32 to vector<64x1xf32>
    %11 = arith.divf %9, %10 : vector<64x1xf32>
    %cst_4 = arith.constant 9.99999974E-6 : f32
    %12 = vector.broadcast %cst_4 : f32 to vector<64x1xf32>
    %13 = arith.addf %11, %12 : vector<64x1xf32>
    %14 = math.rsqrt %13 : vector<64x1xf32>
    %15 = vector.broadcast %14 : vector<64x1xf32> to vector<64x32xf32>
    %16 = arith.mulf %6, %15 : vector<64x32xf32>
    %c0_5 = arith.constant 0 : index
    %c0_6 = arith.constant 0 : index
    %17 = vector.load %arg2[%c0_5, %c0_6] : memref<1x32xf32, #tpu.memory_space<vmem>>, vector<1x32xf32>
    %18 = vector.broadcast %17 : vector<1x32xf32> to vector<64x32xf32>
    %19 = arith.mulf %16, %18 : vector<64x32xf32>
    %c0_7 = arith.constant 0 : index
    %c0_8 = arith.constant 0 : index
    %20 = vector.load %arg3[%c0_7, %c0_8] : memref<1x32xf32, #tpu.memory_space<vmem>>, vector<1x32xf32>
    %21 = vector.broadcast %20 : vector<1x32xf32> to vector<64x32xf32>
    %22 = arith.addf %19, %21 : vector<64x32xf32>
    %23 = arith.truncf %22 : vector<64x32xf32> to vector<64x32xbf16>
    %c0_9 = arith.constant 0 : index
    %c0_10 = arith.constant 0 : index
    %24 = vector.load %arg4[%c0_9, %c0_10] : memref<32x128xbf16, #tpu.memory_space<vmem>>, vector<32x128xbf16>
    %cst_11 = arith.constant dense<0.000000e+00> : vector<64x128xf32>
    %25 = tpu.matmul %23, %24, %cst_11 {dimension_numbers = #tpu.dot_dimension_numbers<[1], [0], [0], [1], [0, 0, 1, 1], [], []>} : vector<64x32xbf16>, vector<32x128xbf16>, vector<64x128xf32> -> vector<64x128xf32>
    %c0_12 = arith.constant 0 : index
    %c0_13 = arith.constant 0 : index
    %26 = vector.load %arg5[%c0_12, %c0_13] : memref<1x128xf32, #tpu.memory_space<vmem>>, vector<1x128xf32>
    %27 = vector.broadcast %26 : vector<1x128xf32> to vector<64x128xf32>
    %28 = arith.addf %25, %27 : vector<64x128xf32>
    %29 = arith.mulf %28, %28 : vector<64x128xf32>
    %30 = arith.mulf %28, %29 : vector<64x128xf32>
    %cst_14 = arith.constant 4.471500e-02 : f32
    %31 = vector.broadcast %cst_14 : f32 to vector<64x128xf32>
    %32 = arith.mulf %31, %30 : vector<64x128xf32>
    %33 = arith.addf %28, %32 : vector<64x128xf32>
    %cst_15 = arith.constant 0.797884583 : f32
    %34 = vector.broadcast %cst_15 : f32 to vector<64x128xf32>
    %35 = arith.mulf %34, %33 : vector<64x128xf32>
    %36 = math.tanh %35 : vector<64x128xf32>
    %cst_16 = arith.constant 1.000000e+00 : f32
    %37 = vector.broadcast %cst_16 : f32 to vector<64x128xf32>
    %38 = arith.addf %37, %36 : vector<64x128xf32>
    %cst_17 = arith.constant 5.000000e-01 : f32
    %39 = vector.broadcast %cst_17 : f32 to vector<64x128xf32>
    %40 = arith.mulf %39, %38 : vector<64x128xf32>
    %41 = arith.mulf %28, %40 : vector<64x128xf32>
    %42 = arith.truncf %41 : vector<64x128xf32> to vector<64x128xbf16>
    %c0_18 = arith.constant 0 : index
    %c0_19 = arith.constant 0 : index
    %43 = vector.load %arg6[%c0_18, %c0_19] : memref<64x128xbf16, #tpu.memory_space<vmem>>, vector<64x128xbf16>
    tpu.vector_store %arg6[%c0_18, %c0_19], %42 {strides = array<i32>} : memref<64x128xbf16, #tpu.memory_space<vmem>>, vector<64x128xbf16>,
    return
  }
  func.func @transform_0(%arg0: i32) -> (i32, i32) {
    %c0_i32 = arith.constant 0 : i32
    %c0_i32_0 = arith.constant 0 : i32
    return %arg0, %c0_i32 : i32, i32
  }
  func.func @transform_1(%arg0: i32) -> (i32, i32) {
    %c0_i32 = arith.constant 0 : i32
    %c0_i32_0 = arith.constant 0 : i32
    %c0_i32_1 = arith.constant 0 : i32
    return %c0_i32, %c0_i32_0 : i32, i32
  }
  func.func @transform_2(%arg0: i32) -> (i32, i32) {
    %c0_i32 = arith.constant 0 : i32
    %c0_i32_0 = arith.constant 0 : i32
    %c0_i32_1 = arith.constant 0 : i32
    return %c0_i32, %c0_i32_0 : i32, i32
  }
  func.func @transform_3(%arg0: i32) -> (i32, i32) {
    %c0_i32 = arith.constant 0 : i32
    %c0_i32_0 = arith.constant 0 : i32
    %c0_i32_1 = arith.constant 0 : i32
    return %c0_i32, %c0_i32_0 : i32, i32
  }
  func.func @transform_4(%arg0: i32) -> (i32, i32) {
    %c0_i32 = arith.constant 0 : i32
    %c0_i32_0 = arith.constant 0 : i32
    %c0_i32_1 = arith.constant 0 : i32
    return %c0_i32, %c0_i32_0 : i32, i32
  }
  func.func @transform_5(%arg0: i32) -> (i32, i32) {
    %c0_i32 = arith.constant 0 : i32
    %c0_i32_0 = arith.constant 0 : i32
    return %arg0, %c0_i32 : i32, i32
  }
}

</mosaic_0001>

<bundles_post_ra>
// kernel: tpu_custom_call.1
= control target key start
LH: loop header
LB: loop body
LE: loop exit
PB: predicated region body
PF: predicated region fallthrough
CT: control target
= control target key end

     0   :  { %10 = vsyncpa [#allocation3], 0  ;;  %s1155_s0 = inlined_call_operand.vmem [shape: f32[128,32], index: 0, kind: input, shape index: {}]   ;;  %s1156_s1 = inlined_call_operand.vmem [shape: f32[1,32], index: 1, kind: input, shape index: {}]   ;;  %s1157_s2 = inlined_call_operand.vmem [shape: f32[1,32], index: 2, kind: input, shape index: {}]   ;;  %s1158_s3 = inlined_call_operand.vmem [shape: bf16[32,128], index: 3, kind: input, shape index: {}]   ;;  %s1159_s4 = inlined_call_operand.vmem [shape: f32[1,128], index: 4, kind: input, shape index: {}]   ;;  %s1160_s5 = inlined_call_operand.hbm [shape: bf16[128,128], index: 5, kind: output, shape index: {}]  }
   0x1   :  { %12 = vsyncpa [#allocation3 + $0x1], 0  ;;  %s918_s18 = smov 0   ;;  %s920_s19 = smov 0  }
   0x2   :  { %s922_s20 = smov 0   ;;  %s924_s21 = smov 0  }
   0x3 LB: > { %s939_s22 = sadd.s32 4294967295, %s883_s21   ;;  %s663_s23 = sadd.s32 4294967294, %s883_s21   ;;  %s883_s21 = sphi %s924_s21, %s1166_s21   ;;  %s879_s20 = sphi %s922_s20, %s1165_s20   ;;  %s875_s19 = sphi %s920_s19, %s1164_s19   ;;  %s871_s18 = sphi %s918_s18, %s1163_s18  }
   0x4   : > { %s943_s24 = sadd.s32 1, %s883_s21   ;;  %s135_s25 = sadd.s32 1, %s879_s20 }
   0x5   : > { %s132_s26 = ssub.s32 %s883_s21, %s943_s24  ;;  %p145_p0 = scmp.ne.s32.totalorder %s879_s20, %s875_s19 }
   0x6   : > { %p133_p1 = scmp.eq.s32.totalorder %s132_s26, 0  ;;  %p146_p2 = scmp.eq.s32.totalorder %s939_s22, 1 }
   0x7   : > { %p151_p3 = scmp.ne.s32.totalorder %s875_s19, %s871_s18  ;;  %p152_p4 = scmp.eq.s32.totalorder %s663_s23, 1 }
   0x8   : > { %s954_s27 = scalar_select %p133_p1, %s879_s20, %s135_s25  }
   0x9   : > { %p956_p5 = por %p146_p2, %p145_p0  ;;  %p960_p6 = por %p152_p4, %p151_p3 }
   0xa   : > { %p666_p7 = scmp.ge.s32.totalorder %s883_s21, 1  ;;  %p191_p8 = scmp.lt.s32.totalorder %s883_s21, 3 }
   0xc   : > { %p192_p9 = pnand %p666_p7, %p191_p8 }
   0xd   : > { %s668_s30 = sshll.u32 (!%p192_p9), %s939_s22, 3  ;;  %vm235_vm0 = vcmask (!%p192_p9), 261120   ;;  %v787_v56 = vld [vmem:[%s1158_s3] sm:$0xff] (!%p192_p9)   ;;  %v788_v57 = vld [vmem:[%s1158_s3 + $0x8] sm:$0xff] (!%p192_p9)   ;;  %s216_s26 = sand.u32 (!%p192_p9), 1, %s875_s19  }
   0xe   : > { %195 = sbr.rel (%p192_p9) target bundleno = 617 (0x269), region = 40  ;;  %p220_p10 = scmp.lt.s32.totalorder (!%p192_p9), %s668_s30, 15  ;;  %730 = vmatprep.subr.bf16.mxu0 (!%p192_p9), %v787_v56  ;;  %742 = vmatprep.subr.bf16.mxu1 (!%p192_p9), %v787_v56 }
   0xf   : > { %731 = vmatpush3.bf16.msra.mxu0 (!%p192_p9), %v787_v56  ;;  %744 = vmatpush3.bf16.msra.mxu1 (!%p192_p9), %v787_v56  ;;  %s885_s13 = smov (!%p192_p9), [#allocation2]  }
  0x10   : > { %732 = vmatprep.subr.bf16.mxu0 (!%p192_p9), %v788_v57  ;;  %743 = vmatprep.subr.bf16.mxu1 (!%p192_p9), %v788_v57  ;;  %s825_s14 = sshll.u32 (!%p192_p9), %s885_s13, 4  ;;  %s826_s14 = int_to_ptr.vmem [resolvable:$false] %s825_s14 }
  0x11   : > { %s827_s15 = scalar_lea.vmem (!%p192_p9), %s826_s14, 1024 }
  0x13   : > { %733 = vmatpush3.bf16.msra.mxu0 (!%p192_p9), %v788_v57  ;;  %745 = vmatpush3.bf16.msra.mxu1 (!%p192_p9), %v788_v57 }
  0x15   : > { %s1168_s30 = smov (!%p220_p10, %s668_s30), 15 }
  0x16   : > { %s669_s6 = sshll.u32 %s1168_s30, 3  ;;  %s667_s30 = sshll.u32 %s216_s26, 5 }
  0x17   : > { %s223_s9 = scalar_lea.vmem %s1155_s0, %s669_s6  ;;  %s700_s6 = sshll.u32 %s939_s22, 9 }
  0x18   : > { %v227_v0 = vld [vmem:[%s223_s9] sm:$0xff]  ;;  %v228_v2 = vld [vmem:[%s223_s9 + $0x8] sm:$0xff]  ;;  %v229_v8 = vld [vmem:[%s223_s9 + $0x10] sm:$0xff]  ;;  %s218_s7 = scalar_lea.vmem [#allocation2], %s667_s30  ;;  %s1108_s11 = scalar_lea.hbm %s1160_s5, %s700_s6 }
  0x19   : > { %v231_v1 = vld [vmem:[%s223_s9 + $0x20] sm:$0xff]  ;;  %v236_v3 = vsel %vm235_vm0, %v227_v0, 0.0  ;;  %v232_v5 = vld [vmem:[%s223_s9 + $0x28] sm:$0xff]  ;;  %v239_v6 = vsel %vm235_vm0, %v228_v2, 0.0  ;;  %v230_v9 = vld [vmem:[%s223_s9 + $0x18] sm:$0xff]  ;;  %v242_v10 = vsel %vm235_vm0, %v229_v8, 0.0 }
  0x1a   : > { %v248_v4 = vsel %vm235_vm0, %v231_v1, 0.0  ;;  %237 = vadd.xlane.f32.xlu0 %v236_v3  ;;  %v251_v7 = vsel %vm235_vm0, %v232_v5, 0.0  ;;  %v245_v11 = vsel %vm235_vm0, %v230_v9, 0.0  ;;  %v233_v12 = vld [vmem:[%s223_s9 + $0x30] sm:$0xff]  ;;  %v234_v13 = vld [vmem:[%s223_s9 + $0x38] sm:$0xff]  ;;  %s601_s8 = sshll.u32 %s218_s7, 4  ;;  %s1110_s8 = int_to_ptr.vmem [resolvable:$true] %s601_s8 }
  0x1b   : > { %249 = vadd.xlane.f32.xlu1 %v248_v4  ;;  %v254_v14 = vsel %vm235_vm0, %v233_v12, 0.0  ;;  %v257_v15 = vsel %vm235_vm0, %v234_v13, 0.0  ;;  %s1114_s22 = scalar_lea.sflag [#allocation3], %s216_s26  ;;  %s821_s12 = scalar_lea.vmem %s1110_s8, 512 }
  0x1c   : > { %p822_p11 = scmp.ne.s32.totalorder %s1110_s8, %s821_s12  ;;  %p828_p0 = scmp.lt.s32.totalorder %s1110_s8, %s826_s14 }
  0x1d   : > { %p829_p1 = scmp.lt.s32.totalorder %s827_s15, %s821_s12 }
  0x1e   : > { %240 = vadd.xlane.f32.xlu0 %v239_v6  ;;  %p823_p12 = pnand %p822_p11, %p956_p5 }
  0x1f   : > { %252 = vadd.xlane.f32.xlu1 %v251_v7  ;;  %p830_p2 = por %p829_p1, %p828_p0 }
  0x20   : > { %p824_p13 = pneg %p823_p12 }
  0x22   : > { %243 = vadd.xlane.f32.xlu0 %v242_v10  ;;  %p831_p3 = pnand %p830_p2, %p824_p13 }
  0x23   : > { %246 = vadd.xlane.f32.xlu1 %v245_v11 }
  0x26   : > { %255 = vadd.xlane.f32.xlu0 %v254_v14 }
  0x27   : > { %258 = vadd.xlane.f32.xlu1 %v257_v15 }
  0xa7   : > { %v238_v16 = vpop.xlane.xlu0 %237 }
  0xa8   : > { %v250_v17 = vpop.xlane.xlu1 %249  ;;  %v261_v18 = vmul.f32 0.03125, %v238_v16 }
  0xa9   : > { %v265_v19 = vmul.f32 0.03125, %v250_v17 }
  0xaa   : > { %v978_v20 = vsub.f32 %v227_v0, %v261_v18 }
  0xab   : > { %v980_v21 = vsub.f32 %v231_v1, %v265_v19  ;;  %v241_v22 = vpop.xlane.xlu0 %240  ;;  %v670_v19 = vld [vmem:[%s1156_s1] ss:$0 sm:$0xff] }
  0xac   : > { %v253_v23 = vpop.xlane.xlu1 %252  ;;  %v262_v24 = vmul.f32 0.03125, %v241_v22  ;;  %v277_v26 = vmul.f32 %v978_v20, %v978_v20 }
  0xad   : > { %v266_v25 = vmul.f32 0.03125, %v253_v23  ;;  %v281_v27 = vmul.f32 %v980_v21, %v980_v21 }
  0xae   : > { %v986_v28 = vsub.f32 %v228_v2, %v262_v24  ;;  %v285_v30 = vsel %vm235_vm0, %v277_v26, 0.0 }
  0xaf   : > { %v988_v29 = vsub.f32 %v232_v5, %v266_v25  ;;  %286 = vadd.xlane.f32.xlu0 %v285_v30  ;;  %v244_v31 = vpop.xlane.xlu0 %243  ;;  %v297_v33 = vsel %vm235_vm0, %v281_v27, 0.0  ;;  %v671_v27 = vld [vmem:[%s1157_s2] ss:$0 sm:$0xff] }
  0xb0   : > { %v247_v32 = vpop.xlane.xlu1 %246  ;;  %v263_v34 = vmul.f32 0.03125, %v244_v31  ;;  %v278_v36 = vmul.f32 %v986_v28, %v986_v28 }
  0xb1   : > { %v264_v35 = vmul.f32 0.03125, %v247_v32  ;;  %v282_v37 = vmul.f32 %v988_v29, %v988_v29 }
  0xb2   : > { %v996_v38 = vsub.f32 %v229_v8, %v263_v34  ;;  %v288_v40 = vsel %vm235_vm0, %v278_v36, 0.0 }
  0xb3   : > { %v998_v39 = vsub.f32 %v230_v9, %v264_v35  ;;  %298 = vadd.xlane.f32.xlu0 %v297_v33  ;;  %289 = vadd.xlane.f32.xlu1 %v288_v40  ;;  %v256_v41 = vpop.xlane.xlu0 %255  ;;  %v300_v43 = vsel %vm235_vm0, %v282_v37, 0.0 }
  0xb4   : > { %v259_v42 = vpop.xlane.xlu1 %258  ;;  %v267_v44 = vmul.f32 0.03125, %v256_v41  ;;  %v279_v46 = vmul.f32 %v996_v38, %v996_v38 }
  0xb5   : > { %v268_v45 = vmul.f32 0.03125, %v259_v42  ;;  %v280_v47 = vmul.f32 %v998_v39, %v998_v39 }
  0xb6   : > { %v1006_v48 = vsub.f32 %v233_v12, %v267_v44  ;;  %v291_v50 = vsel %vm235_vm0, %v279_v46, 0.0 }
  0xb7   : > { %v1008_v49 = vsub.f32 %v234_v13, %v268_v45  ;;  %301 = vadd.xlane.f32.xlu1 %v300_v43  ;;  %292 = vadd.xlane.f32.xlu0 %v291_v50  ;;  %v294_v51 = vsel %vm235_vm0, %v280_v47, 0.0 }
  0xb8   : > { %v283_v52 = vmul.f32 %v1006_v48, %v1006_v48 }
  0xb9   : > { %v284_v53 = vmul.f32 %v1008_v49, %v1008_v49 }
  0xba   : > { %v303_v54 = vsel %vm235_vm0, %v283_v52, 0.0 }
  0xbb   : > { %295 = vadd.xlane.f32.xlu1 %v294_v51  ;;  %304 = vadd.xlane.f32.xlu0 %v303_v54  ;;  %v306_v55 = vsel %vm235_vm0, %v284_v53, 0.0 }
  0xbf   : > { %307 = vadd.xlane.f32.xlu1 %v306_v55 }
 0x13c   : > { %v287_v58 = vpop.xlane.xlu0 %286 }
 0x13d   : > { %v309_v59 = vmul.f32 0.03125, %v287_v58 }
 0x13f   : > { %v317_v60 = vadd.f32 1e-05, %v309_v59 }
 0x140   : > { %v290_v61 = vpop.xlane.xlu1 %289  ;;  %v299_v62 = vpop.xlane.xlu0 %298 }
 0x141   : > { %789 = vrsqrt.f32 %v317_v60  ;;  %v310_v63 = vmul.f32 0.03125, %v290_v61  ;;  %v313_v0 = vmul.f32 0.03125, %v299_v62 }
 0x143   : > { %v318_v1 = vadd.f32 1e-05, %v310_v63  ;;  %v321_v2 = vadd.f32 1e-05, %v313_v0 }
 0x144   : > { %v302_v3 = vpop.xlane.xlu1 %301  ;;  %v293_v4 = vpop.xlane.xlu0 %292 }
 0x145   : > { %791 = vrsqrt.f32 %v318_v1  ;;  %v314_v5 = vmul.f32 0.03125, %v302_v3  ;;  %v311_v6 = vmul.f32 0.03125, %v293_v4 }
 0x146   : > { %793 = vrsqrt.f32 %v321_v2 }
 0x147   : > { %v322_v7 = vadd.f32 1e-05, %v314_v5  ;;  %v319_v8 = vadd.f32 1e-05, %v311_v6 }
 0x148   : > { %v296_v9 = vpop.xlane.xlu1 %295  ;;  %v305_v10 = vpop.xlane.xlu0 %304 }
 0x149   : > { %795 = vrsqrt.f32 %v322_v7  ;;  %v312_v11 = vmul.f32 0.03125, %v296_v9  ;;  %v315_v12 = vmul.f32 0.03125, %v305_v10 }
 0x14a   : > { %797 = vrsqrt.f32 %v319_v8 }
 0x14b   : > { %v790_v13 = vpop.eup %789  ;;  %v320_v14 = vadd.f32 1e-05, %v312_v11  ;;  %v323_v15 = vadd.f32 1e-05, %v315_v12 }
 0x14c   : > { %v308_v16 = vpop.xlane.xlu1 %307  ;;  %v333_v17 = vmul.f32 %v790_v13, %v978_v20 }
 0x14d   : > { %799 = vrsqrt.f32 %v320_v14  ;;  %v316_v18 = vmul.f32 0.03125, %v308_v16 }
 0x14e   : > { %801 = vrsqrt.f32 %v323_v15  ;;  %v348_v26 = vmul.f32 %v670_v19, %v333_v17 }
 0x14f   : > { %v792_v22 = vpop.eup %791  ;;  %v324_v23 = vadd.f32 1e-05, %v316_v18 }
 0x150   : > { %v794_v24 = vpop.eup %793  ;;  %v334_v25 = vmul.f32 %v792_v22, %v986_v28  ;;  %v363_v33 = vadd.f32 %v671_v27, %v348_v26 }
 0x151   : > { %803 = vrsqrt.f32 %v324_v23  ;;  %v337_v20 = vmul.f32 %v794_v24, %v980_v21 }
 0x152   : > { %v349_v30 = vmul.f32 %v670_v19, %v334_v25 }
 0x153   : > { %v796_v31 = vpop.eup %795  ;;  %v352_v36 = vmul.f32 %v670_v19, %v337_v20 }
 0x154   : > { %v798_v32 = vpop.eup %797  ;;  %v364_v34 = vadd.f32 %v671_v27, %v349_v30  ;;  %v338_v35 = vmul.f32 %v796_v31, %v988_v29 }
 0x155   : > { %v335_v37 = vmul.f32 %v798_v32, %v996_v38  ;;  %v367_v44 = vadd.f32 %v671_v27, %v352_v36 }
 0x156   : > { %v371_v40 = vpack.c.bf16 %v364_v34, %v363_v33  ;;  %v353_v28 = vmul.f32 %v670_v19, %v338_v35 }
 0x157   : > { %v800_v41 = vpop.eup %799  ;;  %v350_v45 = vmul.f32 %v670_v19, %v335_v37 }
 0x158   : > { %v802_v42 = vpop.eup %801  ;;  %v336_v43 = vmul.f32 %v800_v41, %v998_v39  ;;  %734 = vmatprep.mubr.msk.bf16.mxu0 %vm235_vm0, %v371_v40  ;;  %v368_v21 = vadd.f32 %v671_v27, %v353_v28 }
 0x159   : > { %v339_v46 = vmul.f32 %v802_v42, %v1006_v48  ;;  %v365_v38 = vadd.f32 %v671_v27, %v350_v45  ;;  %v672_v48 = vld [vmem:[%s1159_s4] ss:$0 sm:$0xff] }
 0x15a   : > { %v373_v47 = vpack.c.bf16 %v368_v21, %v367_v44  ;;  %v351_v50 = vmul.f32 %v670_v19, %v336_v43 }
 0x15b   : > { %v804_v51 = vpop.eup %803  ;;  %v354_v53 = vmul.f32 %v670_v19, %v339_v46 }
 0x15c   : > { %v340_v29 = vmul.f32 %v804_v51, %v1008_v49  ;;  %738 = vmatprep.mubr.msk.bf16.mxu1 %vm235_vm0, %v373_v47  ;;  %v366_v52 = vadd.f32 %v671_v27, %v351_v50 }
 0x15d   : > { %v369_v39 = vadd.f32 %v671_v27, %v354_v53 }
 0x15e   : > { %v372_v54 = vpack.c.bf16 %v366_v52, %v365_v38  ;;  %v355_v55 = vmul.f32 %v670_v19, %v340_v29 }
 0x160   : > { %735 = vmatmul.mubr.msk.bf16.vlgmr.msra.gmra.mrb[0].mxu0 %vm235_vm0, %v372_v54  ;;  %v370_v56 = vadd.f32 %v671_v27, %v355_v55 }
 0x162   : > { %v374_v57 = vpack.c.bf16 %v370_v56, %v369_v39 }
 0x164   : > { %739 = vmatmul.mubr.msk.bf16.vlgmr.msra.gmra.mrb[0].mxu1 %vm235_vm0, %v374_v57 }
 0x233   : > { %v736_v58 = vpop.f32.mrb[0].mxu0 }
 0x234   : > { %v1045_v49 = vadd.f32 %v736_v58, %v672_v48  ;;  %v444_v59 = vpop.f32.mrb[1].mxu0 }
 0x235   : > { %v1047_v60 = vadd.f32 %v672_v48, %v444_v59  ;;  %v737_v61 = vpop.f32.mrb[2].mxu0 }
 0x236   : > { %v477_v62 = vmul.f32 %v1045_v49, %v1045_v49  ;;  %v1051_v63 = vadd.f32 %v737_v61, %v672_v48  ;;  %v447_v0 = vpop.f32.mrb[3].mxu0 }
 0x237   : > { %v475_v1 = vmul.f32 %v1047_v60, %v1047_v60  ;;  %v1055_v2 = vadd.f32 %v672_v48, %v447_v0  ;;  %v740_v3 = vpop.f32.mrb[0].mxu1 }
 0x238   : > { %v485_v4 = vmul.f32 %v477_v62, %v1045_v49  ;;  %v478_v5 = vmul.f32 %v1051_v63, %v1051_v63  ;;  %v1060_v6 = vadd.f32 %v740_v3, %v672_v48  ;;  %v460_v7 = vpop.f32.mrb[1].mxu1 }
 0x239   : > { %v483_v8 = vmul.f32 %v475_v1, %v1047_v60  ;;  %v476_v9 = vmul.f32 %v1055_v2, %v1055_v2  ;;  %v1065_v10 = vadd.f32 %v672_v48, %v460_v7  ;;  %v741_v11 = vpop.f32.mrb[2].mxu1 }
 0x23a   : > { %v493_v12 = vmul.f32 0.044715, %v485_v4  ;;  %v486_v13 = vmul.f32 %v478_v5, %v1051_v63  ;;  %v481_v14 = vmul.f32 %v1060_v6, %v1060_v6  ;;  %v1070_v15 = vadd.f32 %v741_v11, %v672_v48  ;;  %v463_v16 = vpop.f32.mrb[3].mxu1 }
 0x23b   : > { %v491_v17 = vmul.f32 0.044715, %v483_v8  ;;  %v484_v18 = vmul.f32 %v476_v9, %v1055_v2  ;;  %v479_v19 = vmul.f32 %v1065_v10, %v1065_v10  ;;  %v1075_v22 = vadd.f32 %v672_v48, %v463_v16 }
 0x23c   : > { %v501_v23 = vadd.f32 %v493_v12, %v1045_v49  ;;  %v494_v24 = vmul.f32 0.044715, %v486_v13  ;;  %v489_v25 = vmul.f32 %v481_v14, %v1060_v6  ;;  %v482_v26 = vmul.f32 %v1070_v15, %v1070_v15 }
 0x23d   : > { %v499_v27 = vadd.f32 %v491_v17, %v1047_v60  ;;  %v492_v20 = vmul.f32 0.044715, %v484_v18  ;;  %v487_v30 = vmul.f32 %v479_v19, %v1065_v10  ;;  %v480_v31 = vmul.f32 %v1075_v22, %v1075_v22 }
 0x23e   : > { %v509_v32 = vmul.f32 0.7978846, %v501_v23  ;;  %v502_v33 = vadd.f32 %v494_v24, %v1051_v63  ;;  %v497_v34 = vmul.f32 0.044715, %v489_v25  ;;  %v490_v35 = vmul.f32 %v482_v26, %v1070_v15 }
 0x23f   : > { %v507_v36 = vmul.f32 0.7978846, %v499_v27  ;;  %v500_v37 = vadd.f32 %v492_v20, %v1055_v2  ;;  %v495_v40 = vmul.f32 0.044715, %v487_v30  ;;  %v488_v28 = vmul.f32 %v480_v31, %v1075_v22 }
 0x240   : > { %805 = vtanh.f32 %v509_v32  ;;  %v510_v41 = vmul.f32 0.7978846, %v502_v33  ;;  %v505_v42 = vadd.f32 %v497_v34, %v1060_v6  ;;  %v498_v43 = vmul.f32 0.044715, %v490_v35 }
 0x241   : > { %807 = vtanh.f32 %v507_v36  ;;  %v508_v44 = vmul.f32 0.7978846, %v500_v37  ;;  %v503_v21 = vadd.f32 %v495_v40, %v1065_v10  ;;  %v496_v45 = vmul.f32 0.044715, %v488_v28 }
 0x242   : > { %809 = vtanh.f32 %v510_v41  ;;  %v513_v46 = vmul.f32 0.7978846, %v505_v42  ;;  %v506_v47 = vadd.f32 %v498_v43, %v1070_v15 }
 0x243   : > { %811 = vtanh.f32 %v508_v44  ;;  %v511_v50 = vmul.f32 0.7978846, %v503_v21  ;;  %v504_v51 = vadd.f32 %v496_v45, %v1075_v22 }
 0x244   : > { %813 = vtanh.f32 %v513_v46  ;;  %v514_v29 = vmul.f32 0.7978846, %v506_v47 }
 0x245   : > { %815 = vtanh.f32 %v511_v50  ;;  %v512_v38 = vmul.f32 0.7978846, %v504_v51 }
 0x246   : > { %817 = vtanh.f32 %v514_v29 }
 0x247   : > { %819 = vtanh.f32 %v512_v38 }
 0x24a   : > { %v806_v52 = vpop.eup %805 }
 0x24b   : > { %v808_v53 = vpop.eup %807  ;;  %v525_v54 = vadd.f32 1.0, %v806_v52 }
 0x24c   : > { %v810_v55 = vpop.eup %809  ;;  %v523_v39 = vadd.f32 1.0, %v808_v53 }
 0x24d   : > { %v812_v56 = vpop.eup %811  ;;  %v533_v57 = vmul.f32 0.5, %v525_v54  ;;  %v526_v48 = vadd.f32 1.0, %v810_v55 }
 0x24e   : > { %v814_v58 = vpop.eup %813  ;;  %v531_v59 = vmul.f32 0.5, %v523_v39  ;;  %v524_v61 = vadd.f32 1.0, %v812_v56 }
 0x24f   : > { %v816_v62 = vpop.eup %815  ;;  %v534_v0 = vmul.f32 0.5, %v526_v48  ;;  %v529_v1 = vadd.f32 1.0, %v814_v58  ;;  %v541_v8 = vmul.f32 %v533_v57, %v1045_v49 }
 0x250   : > { %v818_v3 = vpop.eup %817  ;;  %v532_v4 = vmul.f32 0.5, %v524_v61  ;;  %v527_v5 = vadd.f32 1.0, %v816_v62  ;;  %v539_v13 = vmul.f32 %v531_v59, %v1047_v60 }
 0x251   : > { %v820_v7 = vpop.eup %819  ;;  %v542_v9 = vmul.f32 %v534_v0, %v1051_v63  ;;  %v537_v11 = vmul.f32 0.5, %v529_v1  ;;  %v530_v12 = vadd.f32 1.0, %v818_v3 }
 0x252   : > { %v540_v14 = vmul.f32 %v532_v4, %v1055_v2  ;;  %v535_v16 = vmul.f32 0.5, %v527_v5  ;;  %v528_v17 = vadd.f32 1.0, %v820_v7 }
 0x253   : > { %v709_v18 = vpack.c.bf16 %v542_v9, %v541_v8  ;;  %v538_v19 = vmul.f32 0.5, %v530_v12  ;;  %v545_v49 = vmul.f32 %v537_v11, %v1060_v6 }
 0x254   : > { %v704_v23 = vpack.c.bf16 %v540_v14, %v539_v13  ;;  %v536_v24 = vmul.f32 0.5, %v528_v17  ;;  %v543_v60 = vmul.f32 %v535_v16, %v1065_v10 }
 0x255   : > { %721 = vst [vmem:[%s218_s7 + $0x8] sm:$0xff] %v709_v18   ;;  %v546_v63 = vmul.f32 %v538_v19, %v1070_v15 }
 0x256   : > { %705 = vst [vmem:[%s218_s7] sm:$0xff] %v704_v23   ;;  %v544_v2 = vmul.f32 %v536_v24, %v1075_v22 }
 0x257   : > { %v719_v25 = vpack.c.bf16 %v546_v63, %v545_v49 }
 0x258   : > { %v714_v26 = vpack.c.bf16 %v544_v2, %v543_v60 }
 0x259   : > { %723 = vst [vmem:[%s218_s7 + $0x18] sm:$0xff] %v719_v25  }
 0x25a   : > { %722 = vst [vmem:[%s218_s7 + $0x10] sm:$0xff] %v714_v26  }
 0x25b   : > { %834 = shalt.err (!%p831_p3)
}
 0x25c   : > { %s835_s16 = scalar_lea.hbm %s1108_s11, 512  ;;  %s839_s25 = scalar_lea.hbm %s1160_s5, 1024 }
 0x25d   : > { %p836_p4 = scmp.ne.s32.totalorder %s1108_s11, %s835_s16  ;;  %p840_p9 = scmp.lt.u32.totalorder %s1108_s11, %s1160_s5 }
 0x25e   : > { %p841_p10 = scmp.lt.u32.totalorder %s839_s25, %s835_s16  ;;  %p843_p12 = scmp.lt.u32.totalorder %s835_s16, %s1108_s11 }
 0x25f   : > { %p837_p7 = pnand %p836_p4, %p956_p5 }
 0x260   : > { %p842_p11 = por %p841_p10, %p840_p9 }
 0x261   : > { %p838_p8 = pneg %p837_p7 }
 0x262   : > { %p844_p13 = por %p843_p12, %p842_p11 }
 0x264   : > { %p845_p0 = pnand %p844_p13, %p838_p8 }
 0x266   : > { %848 = shalt.err (!%p845_p0)
}
 0x267   : > { %s886_s6 = smov 64   ;;  %s887_s7 = smov 4  }
 0x268   : > { %746 = dma.vmem_to_hbm [thread:$0]  (%p956_p5), %s1110_s8, 512, %s1108_s11, %s1114_s22, %s886_s6, %s886_s6, %s887_s7  }
 0x269 PF: > { %p752_p1 = scmp.ge.s32.totalorder %s883_s21, 2  ;;  %s616_s9 = sand.u32 1, %s871_s18  }
 0x26a   : > { %s617_s10 = scalar_lea.sflag [#allocation3], %s616_s9 }
 0x26b   : > { %p749_p2 = pnand %p752_p1, %p960_p6 }
 0x26d   : > { %866 = dma.done.wait (!%p749_p2), %s617_s10, 512  }
 0x26e   : > { %868 = vsyncadd (!%p749_p2), %s617_s10, 4294966784  ;;  %p15_p3 = scmp.ge.s32.totalorder %s943_s24, 4   ;;  %s1163_s18 = smov %s875_s19 }
 0x26f   : > { %s1164_s19 = smov %s879_s20  ;;  %s1165_s20 = smov %s954_s27 }
 0x270   : > { %s1166_s21 = smov %s943_s24  ;;  %17 = sbr.rel (!%p15_p3) target bundleno = 3 (0x3), region = 75 }
 0x277   :  { %622 = vsyncpa [#allocation3], 1 }
 0x278   :  { %624 = vsyncpa [#allocation3 + $0x1], 1 }

</bundles_post_ra>
